<compile_context>
chip_gen: v5e
topology: v5e:2x2
jax: 0.10.0
libtpu: 0.0.40
codegen_flags: <defaults>
</compile_context>

<pallas_src>
import functools

import jax
import jax.numpy as jnp
from jax.experimental import pallas as pl
from jax.experimental.pallas import tpu as pltpu


def _round_up(x, m):
    return (x + m - 1) // m * m


def _choose_block_rows(n_rows, requested):
    """Pick a row-tile size: multiple of 8, grid >= 2 steps when work allows."""
    block = min(requested, _round_up(n_rows, 8))
    # Once there is enough work, halve the tile (to a 128-multiple) so the
    # "parallel" grid axis has >=2 steps and both v7x TensorCores are used.
    half = (_round_up(n_rows, 256) // 2 // 128) * 128
    if half >= 128:
        block = min(block, half)
    return max(block, 8)


# ----------------------------- Pallas kernel -------------------------------

def _doc_emb_kernel(spatial_ref, resid_ref, w1_ref, w2_ref, vecs_ref, out_ref,
                    *, eps):
    # doc_linear1 -> ReLU -> doc_linear2 on the pre-summed spatial embedding.
    # Weights arrive pre-transposed to (H_in, H_out) in the compute dtype
    # (bf16 by default); MXU accumulation forced to f32.
    # vecs_ref is (4, H) f32 = [b1; b2; ln_gamma; ln_beta].
    spatial = spatial_ref[...]
    h1 = jnp.dot(spatial, w1_ref[...], preferred_element_type=jnp.float32)
    h1 = jnp.maximum(h1 + vecs_ref[0:1, :], 0.0)
    temp = jnp.dot(h1.astype(w2_ref.dtype), w2_ref[...],
                   preferred_element_type=jnp.float32) + vecs_ref[1:2, :]

    # residual (= words + expanded_position + token_type, f32) + temp.
    emb = resid_ref[...] + temp

    # LayerNorm over the hidden axis -- statistics in f32.  Padded rows (all
    # zeros except the gathered row-0 embeddings) produce finite garbage that
    # is sliced off by the caller.
    mean = jnp.mean(emb, axis=-1, keepdims=True)
    centered = emb - mean
    var = jnp.mean(centered * centered, axis=-1, keepdims=True)
    normed = centered * jax.lax.rsqrt(var + eps)
    out_ref[...] = (normed * vecs_ref[2:3, :] + vecs_ref[3:4, :]).astype(out_ref.dtype)
    # TODO(synk): dropout omitted (eval-mode identity); a training-mode version
    # would use pltpu.prng_seed / pltpu.prng_random_bits for the mask.


def doc_model_embeddings_pallas(spatial_sum, residual, w1_t, w2_t, vecs,
                                *, eps, block_rows, out_dtype=jnp.bfloat16):
    """spatial_sum (N,H) compute-dtype, residual (N,H) f32.  N % block_rows == 0."""
    n_pad, hidden = spatial_sum.shape
    assert n_pad % block_rows == 0, (n_pad, block_rows)
    grid = (n_pad // block_rows,)

    row_bytes = jnp.dtype(spatial_sum.dtype).itemsize
    w_bytes = jnp.dtype(w1_t.dtype).itemsize
    out_bytes = jnp.dtype(out_dtype).itemsize

    lane = _round_up(hidden, 128)
    sub = _round_up(hidden, 8)

    # VMEM budget: row tiles double-buffered; constants single-buffered.
    vmem_needed = (2 * block_rows * lane * (row_bytes + 4 + out_bytes)
                   + 2 * sub * lane * w_bytes
                   + 8 * lane * 4)
    try:
        vmem_phys = pltpu.get_tpu_info().vmem_capacity_bytes
    except Exception:  # pragma: no cover - conservative default
        vmem_phys = 128 * 1024 * 1024
    vmem_cap = vmem_phys * 3 // 4          # headroom for compiler scratch
    vmem_limit = int(min(vmem_cap, max(32 * 1024 * 1024, 2 * vmem_needed)))

    # Advisory cost estimate: two (TM,H)x(H,H) matmuls per row block + LN.
    flops = 4 * n_pad * hidden * hidden + 12 * n_pad * hidden
    bytes_accessed = (n_pad * hidden * (row_bytes + 4 + out_bytes)
                      + 2 * hidden * hidden * w_bytes
                      + 4 * hidden * 4)
    cost = pl.CostEstimate(flops=int(flops), transcendentals=int(n_pad),
                           bytes_accessed=int(bytes_accessed))

    def build_and_call(single_buffer_consts):
        const_kw = {"pipeline_mode": pl.Buffered(1)} if single_buffer_consts else {}
        row_spec = lambda: pl.BlockSpec((block_rows, hidden), lambda i: (i, 0))
        mat_spec = lambda: pl.BlockSpec((hidden, hidden), lambda i: (0, 0), **const_kw)
        vec_spec = pl.BlockSpec((4, hidden), lambda i: (0, 0), **const_kw)
        return pl.pallas_call(
            functools.partial(_doc_emb_kernel, eps=eps),
            out_shape=jax.ShapeDtypeStruct((n_pad, hidden), out_dtype),
            grid_spec=pltpu.PrefetchScalarGridSpec(
                num_scalar_prefetch=0,
                grid=grid,
                in_specs=[
                    row_spec(),   # spatial_sum
                    row_spec(),   # residual (words + pos + tok), f32
                    mat_spec(),   # w1^T
                    mat_spec(),   # w2^T
                    vec_spec,     # packed [b1; b2; gamma; beta]
                ],
                out_specs=row_spec(),
            ),
            compiler_params=pltpu.CompilerParams(
                dimension_semantics=("parallel",),
                vmem_limit_bytes=vmem_limit),
            cost_estimate=cost,
        )(spatial_sum, residual, w1_t, w2_t, vecs)

    try:
        return build_and_call(True)
    except Exception:
        # Fallback: this jax build rejected pipeline_mode=pl.Buffered(1) for a
        # constant-index operand; default double-buffering is still correct.
        return build_and_call(False)


# ------------------------------ Module wrapper ------------------------------

def make_params(key, vocab_size, hidden, max_pos, type_vocab, max_2d=1024):
    ks = jax.random.split(key, 12)
    u = lambda k, shape, s=0.02: jax.random.normal(k, shape, jnp.float32) * s
    params = {
        "word_emb": u(ks[0], (vocab_size, hidden)).at[0].set(0.0),  # padding_idx=0
        "expanded_pos_emb": u(ks[1], (max_pos * 4, hidden)),
        "x_pos_emb": u(ks[2], (max_2d, hidden)),
        "y_pos_emb": u(ks[3], (max_2d, hidden)),
        "h_pos_emb": u(ks[4], (max_2d, hidden)),
        "w_pos_emb": u(ks[5], (max_2d, hidden)),
        "tok_type_emb": u(ks[6], (type_vocab, hidden)),
        "ln_gamma": jnp.ones((1, hidden), jnp.float32),
        "ln_beta": jnp.zeros((1, hidden), jnp.float32),
    }
    # CustomLinear init: U(-stdv, stdv), stdv = init_scale / sqrt(fan_in)
    stdv1 = 1.0 / (hidden ** 0.5)
    stdv2 = 0.1 / (hidden ** 0.5)
    params["w1"] = jax.random.uniform(ks[7], (hidden, hidden), jnp.float32, -stdv1, stdv1)
    params["b1"] = jax.random.uniform(ks[8], (1, hidden), jnp.float32, -stdv1, stdv1)
    params["w2"] = jax.random.uniform(ks[9], (hidden, hidden), jnp.float32, -stdv2, stdv2)
    params["b2"] = jax.random.uniform(ks[10], (1, hidden), jnp.float32, -stdv2, stdv2)
    return params


def doc_model_embeddings_forward(params, input_ids, bbox,
                                 token_type_ids=None, position_ids=None,
                                 eps=1e-12, compute_dtype=jnp.bfloat16,
                                 out_dtype=jnp.bfloat16, block_rows=512):
    B, S = input_ids.shape
    H = params["word_emb"].shape[1]
    if position_ids is None:
        position_ids = jnp.broadcast_to(jnp.arange(S, dtype=jnp.int32)[None, :], (B, S))
    if token_type_ids is None:
        token_type_ids = jnp.zeros_like(input_ids)

    n_rows = B * S
    block = _choose_block_rows(n_rows, block_rows)
    n_pad = _round_up(n_rows, block)

    # Pad at the int32 id level (cheap) instead of the (N,H) slab level.
    # Padded rows gather row 0 of each table; they are sliced off at the end.
    def pad_ids(x):
        x = x.reshape(-1).astype(jnp.int32)
        return jnp.pad(x, (0, n_pad - n_rows)) if n_pad != n_rows else x

    ids = pad_ids(input_ids)
    pids = pad_ids(position_ids)
    tids = pad_ids(token_type_ids)
    bb = bbox.reshape(-1, 4).astype(jnp.int32)
    if n_pad != n_rows:
        bb = jnp.pad(bb, ((0, n_pad - n_rows), (0, 0)))

    take = lambda tbl, idx: jnp.take(tbl, idx, axis=0)   # (n_pad, H)

    # residual = words + expanded_position + token_type, kept in f32 so the
    # only reduced-precision path is the spatial matmul (weights/inputs bf16).
    residual = (take(params["word_emb"], ids)
                + take(params["expanded_pos_emb"], pids)
                + take(params["tok_type_emb"], tids)).astype(jnp.float32)

    spatial_sum = (take(params["x_pos_emb"], bb[:, 0])
                   + take(params["y_pos_emb"], bb[:, 1])
                   + take(params["x_pos_emb"], bb[:, 2])
                   + take(params["y_pos_emb"], bb[:, 3])
                   + take(params["h_pos_emb"], jnp.abs(bb[:, 3] - bb[:, 1]))
                   + take(params["w_pos_emb"], jnp.abs(bb[:, 2] - bb[:, 0])))

    cd = compute_dtype
    # Pack biases / LN params into one (4, H) f32 operand.
    vecs = jnp.concatenate([params["b1"], params["b2"],
                            params["ln_gamma"], params["ln_beta"]], axis=0)

    # PyTorch Linear computes x @ W.T + b; pre-transpose to (H_in, H_out).
    out_flat = doc_model_embeddings_pallas(
        spatial_sum.astype(cd), residual,
        params["w1"].T.astype(cd), params["w2"].T.astype(cd), vecs,
        eps=eps, block_rows=block, out_dtype=out_dtype)
    return out_flat[:n_rows].reshape(B, S, H)


# Pure-JAX reference for sanity checking.
def _reference(params, input_ids, bbox, eps=1e-12):
    B, S = input_ids.shape
    position_ids = jnp.broadcast_to(jnp.arange(S, dtype=jnp.int32)[None, :], (B, S))
    token_type_ids = jnp.zeros_like(input_ids)
    words = params["word_emb"][input_ids]
    pos = params["expanded_pos_emb"][position_ids]
    tok = params["tok_type_emb"][token_type_ids]
    sp = (params["x_pos_emb"][bbox[:, :, 0]] + params["y_pos_emb"][bbox[:, :, 1]]
          + params["x_pos_emb"][bbox[:, :, 2]] + params["y_pos_emb"][bbox[:, :, 3]]
          + params["h_pos_emb"][jnp.abs(bbox[:, :, 3] - bbox[:, :, 1])]
          + params["w_pos_emb"][jnp.abs(bbox[:, :, 2] - bbox[:, :, 0])])
    h1 = jnp.maximum(sp @ params["w1"].T + params["b1"][0], 0.0)
    temp = h1 @ params["w2"].T + params["b2"][0]
    emb = words + pos + temp + tok
    mean = emb.mean(-1, keepdims=True)
    var = ((emb - mean) ** 2).mean(-1, keepdims=True)
    return (emb - mean) * jax.lax.rsqrt(var + eps) * params["ln_gamma"][0] + params["ln_beta"][0]


if __name__ == "__main__":
    # Small config: vocab=100, hidden=32, max_pos=16, type_vocab=2, B=2, S=8
    VOCAB, HIDDEN, MAX_POS, TYPE_VOCAB = 100, 32, 16, 2
    B, S = 2, 8

    key = jax.random.PRNGKey(0)
    kp, ki, kb = jax.random.split(key, 3)
    params = make_params(kp, VOCAB, HIDDEN, MAX_POS, TYPE_VOCAB)

    input_ids = jax.random.randint(ki, (B, S), 0, VOCAB, dtype=jnp.int32)
    bbox = jax.random.randint(kb, (B, S, 4), 0, 1024, dtype=jnp.int32)

    ref = _reference(params, input_ids, bbox)

    # Strict check: f32 streams + f32 output reproduce the module math exactly.
    out_f32 = jax.block_until_ready(
        doc_model_embeddings_forward(params, input_ids, bbox,
                                     compute_dtype=jnp.float32,
                                     out_dtype=jnp.float32))
    assert out_f32.shape == (B, S, HIDDEN)
    assert jnp.allclose(out_f32, ref, atol=1e-5, rtol=1e-5), "f32 mismatch vs reference"

    # Default fast path: bf16 matmul inputs/weights + bf16 output, f32 residual,
    # f32 accumulation + LayerNorm statistics.
    out = jax.block_until_ready(doc_model_embeddings_forward(params, input_ids, bbox))
    assert out.shape == (B, S, HIDDEN)
    assert out.dtype == jnp.bfloat16
    assert jnp.allclose(out.astype(jnp.float32), ref, atol=5e-2, rtol=5e-2), \
        "bf16 mismatch vs reference"

    print("KERNEL_OK")
</pallas_src>

<mosaic_0001>
module attributes {stable_mosaic.version = 11 : i64} {
  func.func @_doc_emb_kernel(%arg0: i32, %arg1: memref<16x32xf32, #tpu.memory_space<vmem>>, %arg2: memref<16x32xf32, #tpu.memory_space<vmem>>, %arg3: memref<32x32xf32, #tpu.memory_space<vmem>>, %arg4: memref<32x32xf32, #tpu.memory_space<vmem>>, %arg5: memref<4x32xf32, #tpu.memory_space<vmem>>, %arg6: memref<16x32xf32, #tpu.memory_space<vmem>>) attributes {dimension_semantics = [#tpu.dimension_semantics<parallel>], iteration_bounds = array<i64: 1>, scalar_prefetch = 0 : i64, scratch_operands = 0 : i64, tpu.core_type = #tpu.core_type<tc>, window_params = [{transform_indices = @transform_0, window_bounds = array<i64: 16, 32>}, {transform_indices = @transform_1, window_bounds = array<i64: 16, 32>}, {pipeline_mode = #tpu.pipeline_mode<synchronous>, transform_indices = @transform_2, window_bounds = array<i64: 32, 32>}, {pipeline_mode = #tpu.pipeline_mode<synchronous>, transform_indices = @transform_3, window_bounds = array<i64: 32, 32>}, {pipeline_mode = #tpu.pipeline_mode<synchronous>, transform_indices = @transform_4, window_bounds = array<i64: 4, 32>}, {transform_indices = @transform_5, window_bounds = array<i64: 16, 32>}]} {
    %c0 = arith.constant 0 : index
    %c0_0 = arith.constant 0 : index
    %0 = vector.load %arg1[%c0, %c0_0] : memref<16x32xf32, #tpu.memory_space<vmem>>, vector<16x32xf32>
    %c0_1 = arith.constant 0 : index
    %c0_2 = arith.constant 0 : index
    %1 = vector.load %arg3[%c0_1, %c0_2] : memref<32x32xf32, #tpu.memory_space<vmem>>, vector<32x32xf32>
    %cst = arith.constant dense<0.000000e+00> : vector<16x32xf32>
    %2 = tpu.matmul %0, %1, %cst {dimension_numbers = #tpu.dot_dimension_numbers<[1], [0], [0], [1], [0, 0, 1, 1], [], []>} : vector<16x32xf32>, vector<32x32xf32>, vector<16x32xf32> -> vector<16x32xf32>
    %c0_3 = arith.constant 0 : index
    %c0_4 = arith.constant 0 : index
    %3 = vector.load %arg5[%c0_3, %c0_4] : memref<4x32xf32, #tpu.memory_space<vmem>>, vector<1x32xf32>
    %4 = vector.broadcast %3 : vector<1x32xf32> to vector<16x32xf32>
    %5 = arith.addf %2, %4 : vector<16x32xf32>
    %cst_5 = arith.constant 0.000000e+00 : f32
    %6 = vector.broadcast %cst_5 : f32 to vector<16x32xf32>
    %7 = arith.maximumf %5, %6 : vector<16x32xf32>
    %c0_6 = arith.constant 0 : index
    %c0_7 = arith.constant 0 : index
    %8 = vector.load %arg4[%c0_6, %c0_7] : memref<32x32xf32, #tpu.memory_space<vmem>>, vector<32x32xf32>
    %cst_8 = arith.constant dense<0.000000e+00> : vector<16x32xf32>
    %9 = tpu.matmul %7, %8, %cst_8 {dimension_numbers = #tpu.dot_dimension_numbers<[1], [0], [0], [1], [0, 0, 1, 1], [], []>} : vector<16x32xf32>, vector<32x32xf32>, vector<16x32xf32> -> vector<16x32xf32>
    %c1 = arith.constant 1 : index
    %c0_9 = arith.constant 0 : index
    %10 = vector.load %arg5[%c1, %c0_9] : memref<4x32xf32, #tpu.memory_space<vmem>>, vector<1x32xf32>
    %11 = vector.broadcast %10 : vector<1x32xf32> to vector<16x32xf32>
    %12 = arith.addf %9, %11 : vector<16x32xf32>
    %c0_10 = arith.constant 0 : index
    %c0_11 = arith.constant 0 : index
    %13 = vector.load %arg2[%c0_10, %c0_11] : memref<16x32xf32, #tpu.memory_space<vmem>>, vector<16x32xf32>
    %14 = arith.addf %13, %12 : vector<16x32xf32>
    %cst_12 = arith.constant dense<0.000000e+00> : vector<16xf32>
    %15 = vector.multi_reduction <add>, %14, %cst_12 [1] : vector<16x32xf32> to vector<16xf32>
    %16 = vector.shape_cast %15 : vector<16xf32> to vector<16x1xf32>
    %cst_13 = arith.constant 3.200000e+01 : f32
    %17 = vector.broadcast %cst_13 : f32 to vector<16x1xf32>
    %18 = arith.divf %16, %17 : vector<16x1xf32>
    %19 = vector.broadcast %18 : vector<16x1xf32> to vector<16x32xf32>
    %20 = arith.subf %14, %19 : vector<16x32xf32>
    %21 = arith.mulf %20, %20 : vector<16x32xf32>
    %cst_14 = arith.constant dense<0.000000e+00> : vector<16xf32>
    %22 = vector.multi_reduction <add>, %21, %cst_14 [1] : vector<16x32xf32> to vector<16xf32>
    %23 = vector.shape_cast %22 : vector<16xf32> to vector<16x1xf32>
    %cst_15 = arith.constant 3.200000e+01 : f32
    %24 = vector.broadcast %cst_15 : f32 to vector<16x1xf32>
    %25 = arith.divf %23, %24 : vector<16x1xf32>
    %cst_16 = arith.constant 9.99999996E-13 : f32
    %26 = vector.broadcast %cst_16 : f32 to vector<16x1xf32>
    %27 = arith.addf %25, %26 : vector<16x1xf32>
    %28 = math.rsqrt %27 : vector<16x1xf32>
    %29 = vector.broadcast %28 : vector<16x1xf32> to vector<16x32xf32>
    %30 = arith.mulf %20, %29 : vector<16x32xf32>
    %c2 = arith.constant 2 : index
    %c0_17 = arith.constant 0 : index
    %31 = vector.load %arg5[%c2, %c0_17] : memref<4x32xf32, #tpu.memory_space<vmem>>, vector<1x32xf32>
    %32 = vector.broadcast %31 : vector<1x32xf32> to vector<16x32xf32>
    %33 = arith.mulf %30, %32 : vector<16x32xf32>
    %c3 = arith.constant 3 : index
    %c0_18 = arith.constant 0 : index
    %34 = vector.load %arg5[%c3, %c0_18] : memref<4x32xf32, #tpu.memory_space<vmem>>, vector<1x32xf32>
    %35 = vector.broadcast %34 : vector<1x32xf32> to vector<16x32xf32>
    %36 = arith.addf %33, %35 : vector<16x32xf32>
    %c0_19 = arith.constant 0 : index
    %c0_20 = arith.constant 0 : index
    %37 = vector.load %arg6[%c0_19, %c0_20] : memref<16x32xf32, #tpu.memory_space<vmem>>, vector<16x32xf32>
    tpu.vector_store %arg6[%c0_19, %c0_20], %36 {strides = array<i32>} : memref<16x32xf32, #tpu.memory_space<vmem>>, vector<16x32xf32>,
    return
  }
  func.func @transform_0(%arg0: i32) -> (i32, i32) {
    %c0_i32 = arith.constant 0 : i32
    %c0_i32_0 = arith.constant 0 : i32
    return %arg0, %c0_i32 : i32, i32
  }
  func.func @transform_1(%arg0: i32) -> (i32, i32) {
    %c0_i32 = arith.constant 0 : i32
    %c0_i32_0 = arith.constant 0 : i32
    return %arg0, %c0_i32 : i32, i32
  }
  func.func @transform_2(%arg0: i32) -> (i32, i32) {
    %c0_i32 = arith.constant 0 : i32
    %c0_i32_0 = arith.constant 0 : i32
    %c0_i32_1 = arith.constant 0 : i32
    return %c0_i32, %c0_i32_0 : i32, i32
  }
  func.func @transform_3(%arg0: i32) -> (i32, i32) {
    %c0_i32 = arith.constant 0 : i32
    %c0_i32_0 = arith.constant 0 : i32
    %c0_i32_1 = arith.constant 0 : i32
    return %c0_i32, %c0_i32_0 : i32, i32
  }
  func.func @transform_4(%arg0: i32) -> (i32, i32) {
    %c0_i32 = arith.constant 0 : i32
    %c0_i32_0 = arith.constant 0 : i32
    %c0_i32_1 = arith.constant 0 : i32
    return %c0_i32, %c0_i32_0 : i32, i32
  }
  func.func @transform_5(%arg0: i32) -> (i32, i32) {
    %c0_i32 = arith.constant 0 : i32
    %c0_i32_0 = arith.constant 0 : i32
    return %arg0, %c0_i32 : i32, i32
  }
}

module attributes {stable_mosaic.version = 11 : i64} {
  func.func @_doc_emb_kernel(%arg0: i32, %arg1: memref<16x32xf32, #tpu.memory_space<vmem>>, %arg2: memref<16x32xf32, #tpu.memory_space<vmem>>, %arg3: memref<32x32xf32, #tpu.memory_space<vmem>>, %arg4: memref<32x32xf32, #tpu.memory_space<vmem>>, %arg5: memref<4x32xf32, #tpu.memory_space<vmem>>, %arg6: memref<16x32xf32, #tpu.memory_space<vmem>>) attributes {dimension_semantics = [#tpu.dimension_semantics<parallel>], iteration_bounds = array<i64: 1>, scalar_prefetch = 0 : i64, scratch_operands = 0 : i64, tpu.core_type = #tpu.core_type<tc>, window_params = [{transform_indices = @transform_0, window_bounds = array<i64: 16, 32>}, {transform_indices = @transform_1, window_bounds = array<i64: 16, 32>}, {pipeline_mode = #tpu.pipeline_mode<synchronous>, transform_indices = @transform_2, window_bounds = array<i64: 32, 32>}, {pipeline_mode = #tpu.pipeline_mode<synchronous>, transform_indices = @transform_3, window_bounds = array<i64: 32, 32>}, {pipeline_mode = #tpu.pipeline_mode<synchronous>, transform_indices = @transform_4, window_bounds = array<i64: 4, 32>}, {transform_indices = @transform_5, window_bounds = array<i64: 16, 32>}]} {
    %c0 = arith.constant 0 : index
    %c0_0 = arith.constant 0 : index
    %0 = vector.load %arg1[%c0, %c0_0] : memref<16x32xf32, #tpu.memory_space<vmem>>, vector<16x32xf32>
    %c0_1 = arith.constant 0 : index
    %c0_2 = arith.constant 0 : index
    %1 = vector.load %arg3[%c0_1, %c0_2] : memref<32x32xf32, #tpu.memory_space<vmem>>, vector<32x32xf32>
    %cst = arith.constant dense<0.000000e+00> : vector<16x32xf32>
    %2 = tpu.matmul %0, %1, %cst {dimension_numbers = #tpu.dot_dimension_numbers<[1], [0], [0], [1], [0, 0, 1, 1], [], []>} : vector<16x32xf32>, vector<32x32xf32>, vector<16x32xf32> -> vector<16x32xf32>
    %c0_3 = arith.constant 0 : index
    %c0_4 = arith.constant 0 : index
    %3 = vector.load %arg5[%c0_3, %c0_4] : memref<4x32xf32, #tpu.memory_space<vmem>>, vector<1x32xf32>
    %4 = vector.broadcast %3 : vector<1x32xf32> to vector<16x32xf32>
    %5 = arith.addf %2, %4 : vector<16x32xf32>
    %cst_5 = arith.constant 0.000000e+00 : f32
    %6 = vector.broadcast %cst_5 : f32 to vector<16x32xf32>
    %7 = arith.maximumf %5, %6 : vector<16x32xf32>
    %c0_6 = arith.constant 0 : index
    %c0_7 = arith.constant 0 : index
    %8 = vector.load %arg4[%c0_6, %c0_7] : memref<32x32xf32, #tpu.memory_space<vmem>>, vector<32x32xf32>
    %cst_8 = arith.constant dense<0.000000e+00> : vector<16x32xf32>
    %9 = tpu.matmul %7, %8, %cst_8 {dimension_numbers = #tpu.dot_dimension_numbers<[1], [0], [0], [1], [0, 0, 1, 1], [], []>} : vector<16x32xf32>, vector<32x32xf32>, vector<16x32xf32> -> vector<16x32xf32>
    %c1 = arith.constant 1 : index
    %c0_9 = arith.constant 0 : index
    %10 = vector.load %arg5[%c1, %c0_9] : memref<4x32xf32, #tpu.memory_space<vmem>>, vector<1x32xf32>
    %11 = vector.broadcast %10 : vector<1x32xf32> to vector<16x32xf32>
    %12 = arith.addf %9, %11 : vector<16x32xf32>
    %c0_10 = arith.constant 0 : index
    %c0_11 = arith.constant 0 : index
    %13 = vector.load %arg2[%c0_10, %c0_11] : memref<16x32xf32, #tpu.memory_space<vmem>>, vector<16x32xf32>
    %14 = arith.addf %13, %12 : vector<16x32xf32>
    %cst_12 = arith.constant dense<0.000000e+00> : vector<16xf32>
    %15 = vector.multi_reduction <add>, %14, %cst_12 [1] : vector<16x32xf32> to vector<16xf32>
    %16 = vector.shape_cast %15 : vector<16xf32> to vector<16x1xf32>
    %cst_13 = arith.constant 3.200000e+01 : f32
    %17 = vector.broadcast %cst_13 : f32 to vector<16x1xf32>
    %18 = arith.divf %16, %17 : vector<16x1xf32>
    %19 = vector.broadcast %18 : vector<16x1xf32> to vector<16x32xf32>
    %20 = arith.subf %14, %19 : vector<16x32xf32>
    %21 = arith.mulf %20, %20 : vector<16x32xf32>
    %cst_14 = arith.constant dense<0.000000e+00> : vector<16xf32>
    %22 = vector.multi_reduction <add>, %21, %cst_14 [1] : vector<16x32xf32> to vector<16xf32>
    %23 = vector.shape_cast %22 : vector<16xf32> to vector<16x1xf32>
    %cst_15 = arith.constant 3.200000e+01 : f32
    %24 = vector.broadcast %cst_15 : f32 to vector<16x1xf32>
    %25 = arith.divf %23, %24 : vector<16x1xf32>
    %cst_16 = arith.constant 9.99999996E-13 : f32
    %26 = vector.broadcast %cst_16 : f32 to vector<16x1xf32>
    %27 = arith.addf %25, %26 : vector<16x1xf32>
    %28 = math.rsqrt %27 : vector<16x1xf32>
    %29 = vector.broadcast %28 : vector<16x1xf32> to vector<16x32xf32>
    %30 = arith.mulf %20, %29 : vector<16x32xf32>
    %c2 = arith.constant 2 : index
    %c0_17 = arith.constant 0 : index
    %31 = vector.load %arg5[%c2, %c0_17] : memref<4x32xf32, #tpu.memory_space<vmem>>, vector<1x32xf32>
    %32 = vector.broadcast %31 : vector<1x32xf32> to vector<16x32xf32>
    %33 = arith.mulf %30, %32 : vector<16x32xf32>
    %c3 = arith.constant 3 : index
    %c0_18 = arith.constant 0 : index
    %34 = vector.load %arg5[%c3, %c0_18] : memref<4x32xf32, #tpu.memory_space<vmem>>, vector<1x32xf32>
    %35 = vector.broadcast %34 : vector<1x32xf32> to vector<16x32xf32>
    %36 = arith.addf %33, %35 : vector<16x32xf32>
    %c0_19 = arith.constant 0 : index
    %c0_20 = arith.constant 0 : index
    %37 = vector.load %arg6[%c0_19, %c0_20] : memref<16x32xf32, #tpu.memory_space<vmem>>, vector<16x32xf32>
    tpu.vector_store %arg6[%c0_19, %c0_20], %36 {strides = array<i32>} : memref<16x32xf32, #tpu.memory_space<vmem>>, vector<16x32xf32>,
    return
  }
  func.func @transform_0(%arg0: i32) -> (i32, i32) {
    %c0_i32 = arith.constant 0 : i32
    %c0_i32_0 = arith.constant 0 : i32
    return %arg0, %c0_i32 : i32, i32
  }
  func.func @transform_1(%arg0: i32) -> (i32, i32) {
    %c0_i32 = arith.constant 0 : i32
    %c0_i32_0 = arith.constant 0 : i32
    return %arg0, %c0_i32 : i32, i32
  }
  func.func @transform_2(%arg0: i32) -> (i32, i32) {
    %c0_i32 = arith.constant 0 : i32
    %c0_i32_0 = arith.constant 0 : i32
    %c0_i32_1 = arith.constant 0 : i32
    return %c0_i32, %c0_i32_0 : i32, i32
  }
  func.func @transform_3(%arg0: i32) -> (i32, i32) {
    %c0_i32 = arith.constant 0 : i32
    %c0_i32_0 = arith.constant 0 : i32
    %c0_i32_1 = arith.constant 0 : i32
    return %c0_i32, %c0_i32_0 : i32, i32
  }
  func.func @transform_4(%arg0: i32) -> (i32, i32) {
    %c0_i32 = arith.constant 0 : i32
    %c0_i32_0 = arith.constant 0 : i32
    %c0_i32_1 = arith.constant 0 : i32
    return %c0_i32, %c0_i32_0 : i32, i32
  }
  func.func @transform_5(%arg0: i32) -> (i32, i32) {
    %c0_i32 = arith.constant 0 : i32
    %c0_i32_0 = arith.constant 0 : i32
    return %arg0, %c0_i32 : i32, i32
  }
}

</mosaic_0001>

<bundles_post_ra>
// kernel: tpu_custom_call.1
= control target key start
LH: loop header
LB: loop body
LE: loop exit
PB: predicated region body
PF: predicated region fallthrough
CT: control target
= control target key end

     0   :  { %10 = vsyncpa [#allocation3], 0  ;;  %s523_s0 = inlined_call_operand.hbm [shape: f32[16,32], index: 0, kind: input, shape index: {}]   ;;  %s524_s1 = inlined_call_operand.hbm [shape: f32[16,32], index: 1, kind: input, shape index: {}]   ;;  %s525_s2 = inlined_call_operand.hbm [shape: f32[32,32], index: 2, kind: input, shape index: {}]   ;;  %s526_s3 = inlined_call_operand.hbm [shape: f32[32,32], index: 3, kind: input, shape index: {}]   ;;  %s527_s4 = inlined_call_operand.hbm [shape: f32[4,32], index: 4, kind: input, shape index: {}]   ;;  %s528_s5 = inlined_call_operand.hbm [shape: f32[16,32], index: 5, kind: output, shape index: {}]  }
   0x1   :  { %11 = vsyncpa [#allocation6], 0 }
   0x2   :  { %12 = vsyncpa [#allocation9], 0 }
   0x3   :  { %13 = vsyncpa [#allocation4], 0  ;;  %s31_s20 = sshll.u32 %s524_s1, 4  ;;  %s441_s21 = smov [#allocation5]   ;;  %s32_s20 = int_to_ptr.hbm [resolvable:$true] %s31_s20 }
   0x4   :  { %s33_s22 = sshll.u32 %s441_s21, 4  ;;  %s57_s25 = sshll.u32 %s526_s3, 4  ;;  %s34_s22 = int_to_ptr.vmem [resolvable:$true] %s33_s22  ;;  %s58_s25 = int_to_ptr.hbm [resolvable:$true] %s57_s25 }
   0x5   :  { %s442_s26 = smov 128   ;;  %s443_s27 = smov 8  }
   0x6   :  { %39 = dma.hbm_to_vmem [thread:$0]  %s32_s20, 256, %s34_s22, [#allocation6], %s442_s26, %s442_s26, %s443_s27  }
   0x7   :  { %s444_s28 = smov [#allocation8]   ;;  %s18_s1 = sshll.u32 %s523_s0, 4  ;;  %s19_s1 = int_to_ptr.hbm [resolvable:$true] %s18_s1 }
   0x8   :  { %s59_s29 = sshll.u32 %s444_s28, 4  ;;  %s44_s8 = sshll.u32 %s525_s2, 4  ;;  %s60_s29 = int_to_ptr.vmem [resolvable:$true] %s59_s29  ;;  %s45_s8 = int_to_ptr.hbm [resolvable:$true] %s44_s8 }
   0x9   :  { %65 = dma.hbm_to_vmem [thread:$0]  %s58_s25, 512, %s60_s29, [#allocation9], %s442_s26, %s442_s26, %s443_s27  }
   0xa   :  { %s445_s9 = smov [#allocation2]   ;;  %s446_s11 = smov [#allocation7]  }
   0xb   :  { %s20_s10 = sshll.u32 %s445_s9, 4  ;;  %s46_s0 = sshll.u32 %s446_s11, 4  ;;  %s21_s10 = int_to_ptr.vmem [resolvable:$true] %s20_s10  ;;  %s47_s0 = int_to_ptr.vmem [resolvable:$true] %s46_s0 }
   0xc   :  { %26 = dma.hbm_to_vmem [thread:$0]  %s19_s1, 256, %s21_s10, [#allocation3], %s442_s26, %s442_s26, %s443_s27  }
   0xd   :  { %s71_s14 = sshll.u32 %s527_s4, 4  ;;  %s447_s2 = smov [#allocation10]   ;;  %s72_s14 = int_to_ptr.hbm [resolvable:$true] %s71_s14 }
   0xe   :  { %52 = dma.hbm_to_vmem [thread:$0]  %s45_s8, 512, %s47_s0, [#allocation6], %s442_s26, %s442_s26, %s443_s27  }
   0xf   :  { %s73_s15 = sshll.u32 %s447_s2, 4  ;;  %s74_s15 = int_to_ptr.vmem [resolvable:$true] %s73_s15 }
  0x10   :  { %76 = dma.hbm_to_vmem [thread:$0]  %s72_s14, 64, %s74_s15, [#allocation9]  }
  0x11   :  { %433 = dma.done.wait [#allocation3], 256  }
  0x12   :  { %434 = vsyncadd [#allocation3], 4294967040 }
  0x13   :  { %435 = dma.done.wait [#allocation6], 768  }
  0x14   :  { %436 = vsyncadd [#allocation6], 4294966528 }
  0x15   :  { %437 = dma.done.wait [#allocation9], 576  }
  0x16   :  { %438 = vsyncadd [#allocation9], 4294966720  ;;  %v102_v0 = vld [vmem:[#allocation7 + $0x18] sm:$0xff]  ;;  %v101_v1 = vld [vmem:[#allocation7 + $0x10] sm:$0xff]  ;;  %vm105_vm0 = vcmask 261120   ;;  %v448_v28 = vmov 32.0  }
  0x17   :  { %124 = vmatpush.msra.mxu0 %v102_v0  ;;  %262 = vmatpush.msra.mxu2 %v102_v0  ;;  %v100_v2 = vld [vmem:[#allocation7 + $0x8] sm:$0xff]  ;;  %v140_v3 = vld [vmem:[#allocation8 + $0x18] sm:$0xff]  ;;  %v99_v4 = vld [vmem:[#allocation7] sm:$0xff]  ;;  %283 = vrcp.f32 %v448_v28  ;;  %s449_s4 = smov [#allocation11]   ;;  %s243_s19 = sshll.u32 %s528_s5, 4  ;;  %s244_s19 = int_to_ptr.hbm [resolvable:$true] %s243_s19 }
  0x18   :  { %161 = vmatpush.msra.mxu1 %v140_v3  ;;  %266 = vmatpush.msra.mxu3 %v140_v3  ;;  %v97_v5 = vld [vmem:[#allocation2] sm:$0xff]  ;;  %v98_v6 = vld [vmem:[#allocation2 + $0x8] sm:$0xff]  ;;  %v139_v7 = vld [vmem:[#allocation8 + $0x10] sm:$0xff]  ;;  %s241_s16 = sshll.u32 %s449_s4, 4  ;;  %s242_s16 = int_to_ptr.vmem [resolvable:$true] %s241_s16 }
  0x19   :  { %125 = vmatpush.msra.mxu0 %v101_v1  ;;  %263 = vmatpush.msra.mxu2 %v101_v1  ;;  %v138_v8 = vld [vmem:[#allocation8 + $0x8] sm:$0xff]  ;;  %v137_v9 = vld [vmem:[#allocation8] sm:$0xff]  ;;  %v172_v19 = vld [vmem:[#allocation5] sm:$0xff] }
  0x1a   :  { %162 = vmatpush.msra.mxu1 %v139_v7  ;;  %267 = vmatpush.msra.mxu3 %v139_v7  ;;  %v279_v10 = vld [vmem:[#allocation10] ss:$0 sm:$0xff]  ;;  %v280_v17 = vld [vmem:[#allocation10 + $0x1] ss:$0 sm:$0xff]  ;;  %v173_v24 = vld [vmem:[#allocation5 + $0x8] sm:$0xff] }
  0x1b   :  { %126 = vmatpush.msra.mxu0 %v100_v2  ;;  %264 = vmatpush.msra.mxu2 %v100_v2  ;;  %v281_v57 = vld [vmem:[#allocation10 + $0x2] ss:$0 sm:$0xff]  ;;  %v282_v61 = vld [vmem:[#allocation10 + $0x3] ss:$0 sm:$0xff] }
  0x1c   :  { %163 = vmatpush.msra.mxu1 %v138_v8  ;;  %268 = vmatpush.msra.mxu3 %v138_v8 }
  0x1d   :  { %127 = vmatpush.msra.mxu0 %v99_v4  ;;  %265 = vmatpush.msra.mxu2 %v99_v4  ;;  %v284_v29 = vpop.eup %283 }
  0x1e   :  { %258 = vmatmul.msk.f32.vlgmr.msra.gmra.mxu0 %vm105_vm0, %v97_v5  ;;  %259 = vmatmul.msk.f32.vlgmr.msra.gmra.mxu2 %vm105_vm0, %v98_v6  ;;  %v183_v30 = vmul.f32 32.0, %v284_v29  ;;  %vm187_vm1 = vweird.f32 %v284_v29 }
  0x1f   :  { %164 = vmatpush.msra.mxu1 %v137_v9  ;;  %269 = vmatpush.msra.mxu3 %v137_v9 }
  0x20   :  { %v184_v31 = vsub.f32 1.0, %v183_v30 }
  0x22   :  { %v185_v32 = vmul.f32 %v284_v29, %v184_v31 }
  0x24   :  { %v186_v33 = vadd.f32 %v284_v29, %v185_v32 }
  0x26   :  { %v188_v34 = vsel %vm187_vm1, %v284_v29, %v186_v33 }
  0x9b   :  { %v129_v11 = vpop.f32.mrf.mxu0 }
  0x9c   :  { %v130_v12 = vadd.f32 %v279_v10, %v129_v11 }
  0x9e   :  { %v135_v13 = vmax.f32 %v130_v12, 0.0 }
  0xa0   :  { %260 = vmatmul.msk.f32.vlgmr.msra.gmra.mxu1 %vm105_vm0, %v135_v13 }
  0xa1   :  { %v132_v14 = vpop.f32.mrf.mxu2 }
  0xa2   :  { %v133_v15 = vadd.f32 %v279_v10, %v132_v14 }
  0xa4   :  { %v136_v16 = vmax.f32 %v133_v15, 0.0 }
  0xa6   :  { %261 = vmatmul.msk.f32.vlgmr.msra.gmra.mxu3 %vm105_vm0, %v136_v16 }
 0x11d   :  { %v166_v18 = vpop.f32.mrf.mxu1 }
 0x11e   :  { %v167_v20 = vadd.f32 %v280_v17, %v166_v18 }
 0x120   :  { %v174_v21 = vadd.f32 %v172_v19, %v167_v20 }
 0x122   :  { %v176_v22 = vsel %vm105_vm0, %v174_v21, 0.0 }
 0x123   :  { %177 = vadd.xlane.f32.xlu0 %v176_v22 }
 0x129   :  { %v169_v23 = vpop.f32.mrf.mxu3 }
 0x12a   :  { %v170_v25 = vadd.f32 %v280_v17, %v169_v23 }
 0x12c   :  { %v175_v26 = vadd.f32 %v173_v24, %v170_v25 }
 0x12e   :  { %v179_v27 = vsel %vm105_vm0, %v175_v26, 0.0 }
 0x12f   :  { %180 = vadd.xlane.f32.xlu0 %v179_v27 }
 0x196   :  { %v178_v35 = vpop.xlane.xlu0 %177 }
 0x197   :  { %v189_v36 = vmul.f32 %v188_v34, %v178_v35 }
 0x199   :  { %v191_v37 = vsub.f32 %v174_v21, %v189_v36 }
 0x19b   :  { %v193_v38 = vmul.f32 %v191_v37, %v191_v37 }
 0x19d   :  { %v195_v39 = vsel %vm105_vm0, %v193_v38, 0.0 }
 0x19e   :  { %196 = vadd.xlane.f32.xlu1 %v195_v39 }
 0x1a2   :  { %v181_v40 = vpop.xlane.xlu0 %180 }
 0x1a3   :  { %v190_v41 = vmul.f32 %v188_v34, %v181_v40 }
 0x1a5   :  { %v192_v42 = vsub.f32 %v175_v26, %v190_v41 }
 0x1a7   :  { %v194_v43 = vmul.f32 %v192_v42, %v192_v42 }
 0x1a9   :  { %v198_v44 = vsel %vm105_vm0, %v194_v43, 0.0 }
 0x1aa   :  { %199 = vadd.xlane.f32.xlu1 %v198_v44 }
 0x211   :  { %v197_v45 = vpop.xlane.xlu1 %196 }
 0x212   :  { %v201_v46 = vmul.f32 %v197_v45, %v188_v34 }
 0x214   :  { %v203_v47 = vadd.f32 1e-12, %v201_v46 }
 0x216   :  { %285 = vrsqrt.f32 %v203_v47  ;;  %vm211_vm3 = vweird.f32 %v203_v47 }
 0x21c   :  { %v286_v48 = vpop.eup %285 }
 0x21d   :  { %v206_v49 = vmul.f32 %v286_v48, %v203_v47  ;;  %v200_v50 = vpop.xlane.xlu1 %199  ;;  %vm212_vm2 = vweird.f32 %v286_v48 }
 0x21e   :  { %v202_v51 = vmul.f32 %v200_v50, %v188_v34  ;;  %vm213_vm4 = vmor %vm211_vm3, %vm212_vm2 }
 0x21f   :  { %v207_v52 = vmul.f32 %v286_v48, %v206_v49 }
 0x220   :  { %v204_v53 = vadd.f32 1e-12, %v202_v51 }
 0x221   :  { %v208_v54 = vmul.f32 0.5, %v207_v52 }
 0x222   :  { %287 = vrsqrt.f32 %v204_v53  ;;  %vm221_vm6 = vweird.f32 %v204_v53 }
 0x223   :  { %v209_v55 = vsub.f32 1.5, %v208_v54 }
 0x225   :  { %v210_v56 = vmul.f32 %v286_v48, %v209_v55 }
 0x227   :  { %v214_v58 = vsel %vm213_vm4, %v286_v48, %v210_v56 }
 0x228   :  { %v288_v59 = vpop.eup %287  ;;  %v225_v60 = vmul.f32 %v214_v58, %v191_v37 }
 0x229   :  { %v216_v62 = vmul.f32 %v288_v59, %v204_v53  ;;  %vm222_vm5 = vweird.f32 %v288_v59 }
 0x22a   :  { %v229_v63 = vmul.f32 %v281_v57, %v225_v60  ;;  %vm223_vm7 = vmor %vm221_vm6, %vm222_vm5 }
 0x22b   :  { %v217_v0 = vmul.f32 %v288_v59, %v216_v62 }
 0x22c   :  { %v233_v1 = vadd.f32 %v282_v61, %v229_v63 }
 0x22d   :  { %v218_v2 = vmul.f32 0.5, %v217_v0 }
 0x22e   :  { %235 = vst.msk [vmem:[#allocation11] sm:$0xff] %vm105_vm0, %v233_v1 }
 0x22f   :  { %v219_v3 = vsub.f32 1.5, %v218_v2 }
 0x231   :  { %v220_v4 = vmul.f32 %v288_v59, %v219_v3 }
 0x233   :  { %v224_v5 = vsel %vm223_vm7, %v288_v59, %v220_v4 }
 0x234   :  { %v226_v6 = vmul.f32 %v224_v5, %v192_v42 }
 0x236   :  { %v230_v7 = vmul.f32 %v281_v57, %v226_v6 }
 0x238   :  { %v234_v8 = vadd.f32 %v282_v61, %v230_v7 }
 0x23a   :  { %236 = vst.msk [vmem:[#allocation11 + $0x8] sm:$0xff] %vm105_vm0, %v234_v8 }
 0x23b   :  { %249 = dma.vmem_to_hbm [thread:$0]  %s242_s16, 256, %s244_s19, [#allocation4], %s442_s26, %s442_s26, %s443_s27  }
 0x23c   :  { %439 = dma.done.wait [#allocation4], 256  }
 0x23d   :  { %440 = vsyncadd [#allocation4], 4294967040 }
 0x23e   :  { %254 = vsyncpa [#allocation3], 1 }
 0x23f   :  { %255 = vsyncpa [#allocation6], 1 }
 0x240   :  { %256 = vsyncpa [#allocation9], 1 }
 0x241   :  { %257 = vsyncpa [#allocation4], 1 }

// kernel: tpu_custom_call.1
= control target key start
LH: loop header
LB: loop body
LE: loop exit
PB: predicated region body
PF: predicated region fallthrough
CT: control target
= control target key end

     0   :  { %10 = vsyncpa [#allocation3], 0  ;;  %s523_s0 = inlined_call_operand.hbm [shape: f32[16,32], index: 0, kind: input, shape index: {}]   ;;  %s524_s1 = inlined_call_operand.hbm [shape: f32[16,32], index: 1, kind: input, shape index: {}]   ;;  %s525_s2 = inlined_call_operand.hbm [shape: f32[32,32], index: 2, kind: input, shape index: {}]   ;;  %s526_s3 = inlined_call_operand.hbm [shape: f32[32,32], index: 3, kind: input, shape index: {}]   ;;  %s527_s4 = inlined_call_operand.hbm [shape: f32[4,32], index: 4, kind: input, shape index: {}]   ;;  %s528_s5 = inlined_call_operand.hbm [shape: f32[16,32], index: 5, kind: output, shape index: {}]  }
   0x1   :  { %11 = vsyncpa [#allocation6], 0 }
   0x2   :  { %12 = vsyncpa [#allocation9], 0 }
   0x3   :  { %13 = vsyncpa [#allocation4], 0  ;;  %s31_s20 = sshll.u32 %s524_s1, 4  ;;  %s441_s21 = smov [#allocation5]   ;;  %s32_s20 = int_to_ptr.hbm [resolvable:$true] %s31_s20 }
   0x4   :  { %s33_s22 = sshll.u32 %s441_s21, 4  ;;  %s57_s25 = sshll.u32 %s526_s3, 4  ;;  %s34_s22 = int_to_ptr.vmem [resolvable:$true] %s33_s22  ;;  %s58_s25 = int_to_ptr.hbm [resolvable:$true] %s57_s25 }
   0x5   :  { %s442_s26 = smov 128   ;;  %s443_s27 = smov 8  }
   0x6   :  { %39 = dma.hbm_to_vmem [thread:$0]  %s32_s20, 256, %s34_s22, [#allocation6], %s442_s26, %s442_s26, %s443_s27  }
   0x7   :  { %s444_s28 = smov [#allocation8]   ;;  %s18_s1 = sshll.u32 %s523_s0, 4  ;;  %s19_s1 = int_to_ptr.hbm [resolvable:$true] %s18_s1 }
   0x8   :  { %s59_s29 = sshll.u32 %s444_s28, 4  ;;  %s44_s8 = sshll.u32 %s525_s2, 4  ;;  %s60_s29 = int_to_ptr.vmem [resolvable:$true] %s59_s29  ;;  %s45_s8 = int_to_ptr.hbm [resolvable:$true] %s44_s8 }
   0x9   :  { %65 = dma.hbm_to_vmem [thread:$0]  %s58_s25, 512, %s60_s29, [#allocation9], %s442_s26, %s442_s26, %s443_s27  }
   0xa   :  { %s445_s9 = smov [#allocation2]   ;;  %s446_s11 = smov [#allocation7]  }
   0xb   :  { %s20_s10 = sshll.u32 %s445_s9, 4  ;;  %s46_s0 = sshll.u32 %s446_s11, 4  ;;  %s21_s10 = int_to_ptr.vmem [resolvable:$true] %s20_s10  ;;  %s47_s0 = int_to_ptr.vmem [resolvable:$true] %s46_s0 }
   0xc   :  { %26 = dma.hbm_to_vmem [thread:$0]  %s19_s1, 256, %s21_s10, [#allocation3], %s442_s26, %s442_s26, %s443_s27  }
   0xd   :  { %s71_s14 = sshll.u32 %s527_s4, 4  ;;  %s447_s2 = smov [#allocation10]   ;;  %s72_s14 = int_to_ptr.hbm [resolvable:$true] %s71_s14 }
   0xe   :  { %52 = dma.hbm_to_vmem [thread:$0]  %s45_s8, 512, %s47_s0, [#allocation6], %s442_s26, %s442_s26, %s443_s27  }
   0xf   :  { %s73_s15 = sshll.u32 %s447_s2, 4  ;;  %s74_s15 = int_to_ptr.vmem [resolvable:$true] %s73_s15 }
  0x10   :  { %76 = dma.hbm_to_vmem [thread:$0]  %s72_s14, 64, %s74_s15, [#allocation9]  }
  0x11   :  { %433 = dma.done.wait [#allocation3], 256  }
  0x12   :  { %434 = vsyncadd [#allocation3], 4294967040 }
  0x13   :  { %435 = dma.done.wait [#allocation6], 768  }
  0x14   :  { %436 = vsyncadd [#allocation6], 4294966528 }
  0x15   :  { %437 = dma.done.wait [#allocation9], 576  }
  0x16   :  { %438 = vsyncadd [#allocation9], 4294966720  ;;  %v102_v0 = vld [vmem:[#allocation7 + $0x18] sm:$0xff]  ;;  %v101_v1 = vld [vmem:[#allocation7 + $0x10] sm:$0xff]  ;;  %vm105_vm0 = vcmask 261120   ;;  %v448_v28 = vmov 32.0  }
  0x17   :  { %124 = vmatpush.msra.mxu0 %v102_v0  ;;  %262 = vmatpush.msra.mxu2 %v102_v0  ;;  %v100_v2 = vld [vmem:[#allocation7 + $0x8] sm:$0xff]  ;;  %v140_v3 = vld [vmem:[#allocation8 + $0x18] sm:$0xff]  ;;  %v99_v4 = vld [vmem:[#allocation7] sm:$0xff]  ;;  %283 = vrcp.f32 %v448_v28  ;;  %s449_s4 = smov [#allocation11]   ;;  %s243_s19 = sshll.u32 %s528_s5, 4  ;;  %s244_s19 = int_to_ptr.hbm [resolvable:$true] %s243_s19 }
  0x18   :  { %161 = vmatpush.msra.mxu1 %v140_v3  ;;  %266 = vmatpush.msra.mxu3 %v140_v3  ;;  %v97_v5 = vld [vmem:[#allocation2] sm:$0xff]  ;;  %v98_v6 = vld [vmem:[#allocation2 + $0x8] sm:$0xff]  ;;  %v139_v7 = vld [vmem:[#allocation8 + $0x10] sm:$0xff]  ;;  %s241_s16 = sshll.u32 %s449_s4, 4  ;;  %s242_s16 = int_to_ptr.vmem [resolvable:$true] %s241_s16 }
  0x19   :  { %125 = vmatpush.msra.mxu0 %v101_v1  ;;  %263 = vmatpush.msra.mxu2 %v101_v1  ;;  %v138_v8 = vld [vmem:[#allocation8 + $0x8] sm:$0xff]  ;;  %v137_v9 = vld [vmem:[#allocation8] sm:$0xff]  ;;  %v172_v19 = vld [vmem:[#allocation5] sm:$0xff] }
  0x1a   :  { %162 = vmatpush.msra.mxu1 %v139_v7  ;;  %267 = vmatpush.msra.mxu3 %v139_v7  ;;  %v279_v10 = vld [vmem:[#allocation10] ss:$0 sm:$0xff]  ;;  %v280_v17 = vld [vmem:[#allocation10 + $0x1] ss:$0 sm:$0xff]  ;;  %v173_v24 = vld [vmem:[#allocation5 + $0x8] sm:$0xff] }
  0x1b   :  { %126 = vmatpush.msra.mxu0 %v100_v2  ;;  %264 = vmatpush.msra.mxu2 %v100_v2  ;;  %v281_v57 = vld [vmem:[#allocation10 + $0x2] ss:$0 sm:$0xff]  ;;  %v282_v61 = vld [vmem:[#allocation10 + $0x3] ss:$0 sm:$0xff] }
  0x1c   :  { %163 = vmatpush.msra.mxu1 %v138_v8  ;;  %268 = vmatpush.msra.mxu3 %v138_v8 }
  0x1d   :  { %127 = vmatpush.msra.mxu0 %v99_v4  ;;  %265 = vmatpush.msra.mxu2 %v99_v4  ;;  %v284_v29 = vpop.eup %283 }
  0x1e   :  { %258 = vmatmul.msk.f32.vlgmr.msra.gmra.mxu0 %vm105_vm0, %v97_v5  ;;  %259 = vmatmul.msk.f32.vlgmr.msra.gmra.mxu2 %vm105_vm0, %v98_v6  ;;  %v183_v30 = vmul.f32 32.0, %v284_v29  ;;  %vm187_vm1 = vweird.f32 %v284_v29 }
  0x1f   :  { %164 = vmatpush.msra.mxu1 %v137_v9  ;;  %269 = vmatpush.msra.mxu3 %v137_v9 }
  0x20   :  { %v184_v31 = vsub.f32 1.0, %v183_v30 }
  0x22   :  { %v185_v32 = vmul.f32 %v284_v29, %v184_v31 }
  0x24   :  { %v186_v33 = vadd.f32 %v284_v29, %v185_v32 }
  0x26   :  { %v188_v34 = vsel %vm187_vm1, %v284_v29, %v186_v33 }
  0x9b   :  { %v129_v11 = vpop.f32.mrf.mxu0 }
  0x9c   :  { %v130_v12 = vadd.f32 %v279_v10, %v129_v11 }
  0x9e   :  { %v135_v13 = vmax.f32 %v130_v12, 0.0 }
  0xa0   :  { %260 = vmatmul.msk.f32.vlgmr.msra.gmra.mxu1 %vm105_vm0, %v135_v13 }
  0xa1   :  { %v132_v14 = vpop.f32.mrf.mxu2 }
  0xa2   :  { %v133_v15 = vadd.f32 %v279_v10, %v132_v14 }
  0xa4   :  { %v136_v16 = vmax.f32 %v133_v15, 0.0 }
  0xa6   :  { %261 = vmatmul.msk.f32.vlgmr.msra.gmra.mxu3 %vm105_vm0, %v136_v16 }
 0x11d   :  { %v166_v18 = vpop.f32.mrf.mxu1 }
 0x11e   :  { %v167_v20 = vadd.f32 %v280_v17, %v166_v18 }
 0x120   :  { %v174_v21 = vadd.f32 %v172_v19, %v167_v20 }
 0x122   :  { %v176_v22 = vsel %vm105_vm0, %v174_v21, 0.0 }
 0x123   :  { %177 = vadd.xlane.f32.xlu0 %v176_v22 }
 0x129   :  { %v169_v23 = vpop.f32.mrf.mxu3 }
 0x12a   :  { %v170_v25 = vadd.f32 %v280_v17, %v169_v23 }
 0x12c   :  { %v175_v26 = vadd.f32 %v173_v24, %v170_v25 }
 0x12e   :  { %v179_v27 = vsel %vm105_vm0, %v175_v26, 0.0 }
 0x12f   :  { %180 = vadd.xlane.f32.xlu0 %v179_v27 }
 0x196   :  { %v178_v35 = vpop.xlane.xlu0 %177 }
 0x197   :  { %v189_v36 = vmul.f32 %v188_v34, %v178_v35 }
 0x199   :  { %v191_v37 = vsub.f32 %v174_v21, %v189_v36 }
 0x19b   :  { %v193_v38 = vmul.f32 %v191_v37, %v191_v37 }
 0x19d   :  { %v195_v39 = vsel %vm105_vm0, %v193_v38, 0.0 }
 0x19e   :  { %196 = vadd.xlane.f32.xlu1 %v195_v39 }
 0x1a2   :  { %v181_v40 = vpop.xlane.xlu0 %180 }
 0x1a3   :  { %v190_v41 = vmul.f32 %v188_v34, %v181_v40 }
 0x1a5   :  { %v192_v42 = vsub.f32 %v175_v26, %v190_v41 }
 0x1a7   :  { %v194_v43 = vmul.f32 %v192_v42, %v192_v42 }
 0x1a9   :  { %v198_v44 = vsel %vm105_vm0, %v194_v43, 0.0 }
 0x1aa   :  { %199 = vadd.xlane.f32.xlu1 %v198_v44 }
 0x211   :  { %v197_v45 = vpop.xlane.xlu1 %196 }
 0x212   :  { %v201_v46 = vmul.f32 %v197_v45, %v188_v34 }
 0x214   :  { %v203_v47 = vadd.f32 1e-12, %v201_v46 }
 0x216   :  { %285 = vrsqrt.f32 %v203_v47  ;;  %vm211_vm3 = vweird.f32 %v203_v47 }
 0x21c   :  { %v286_v48 = vpop.eup %285 }
 0x21d   :  { %v206_v49 = vmul.f32 %v286_v48, %v203_v47  ;;  %v200_v50 = vpop.xlane.xlu1 %199  ;;  %vm212_vm2 = vweird.f32 %v286_v48 }
 0x21e   :  { %v202_v51 = vmul.f32 %v200_v50, %v188_v34  ;;  %vm213_vm4 = vmor %vm211_vm3, %vm212_vm2 }
 0x21f   :  { %v207_v52 = vmul.f32 %v286_v48, %v206_v49 }
 0x220   :  { %v204_v53 = vadd.f32 1e-12, %v202_v51 }
 0x221   :  { %v208_v54 = vmul.f32 0.5, %v207_v52 }
 0x222   :  { %287 = vrsqrt.f32 %v204_v53  ;;  %vm221_vm6 = vweird.f32 %v204_v53 }
 0x223   :  { %v209_v55 = vsub.f32 1.5, %v208_v54 }
 0x225   :  { %v210_v56 = vmul.f32 %v286_v48, %v209_v55 }
 0x227   :  { %v214_v58 = vsel %vm213_vm4, %v286_v48, %v210_v56 }
 0x228   :  { %v288_v59 = vpop.eup %287  ;;  %v225_v60 = vmul.f32 %v214_v58, %v191_v37 }
 0x229   :  { %v216_v62 = vmul.f32 %v288_v59, %v204_v53  ;;  %vm222_vm5 = vweird.f32 %v288_v59 }
 0x22a   :  { %v229_v63 = vmul.f32 %v281_v57, %v225_v60  ;;  %vm223_vm7 = vmor %vm221_vm6, %vm222_vm5 }
 0x22b   :  { %v217_v0 = vmul.f32 %v288_v59, %v216_v62 }
 0x22c   :  { %v233_v1 = vadd.f32 %v282_v61, %v229_v63 }
 0x22d   :  { %v218_v2 = vmul.f32 0.5, %v217_v0 }
 0x22e   :  { %235 = vst.msk [vmem:[#allocation11] sm:$0xff] %vm105_vm0, %v233_v1 }
 0x22f   :  { %v219_v3 = vsub.f32 1.5, %v218_v2 }
 0x231   :  { %v220_v4 = vmul.f32 %v288_v59, %v219_v3 }
 0x233   :  { %v224_v5 = vsel %vm223_vm7, %v288_v59, %v220_v4 }
 0x234   :  { %v226_v6 = vmul.f32 %v224_v5, %v192_v42 }
 0x236   :  { %v230_v7 = vmul.f32 %v281_v57, %v226_v6 }
 0x238   :  { %v234_v8 = vadd.f32 %v282_v61, %v230_v7 }
 0x23a   :  { %236 = vst.msk [vmem:[#allocation11 + $0x8] sm:$0xff] %vm105_vm0, %v234_v8 }
 0x23b   :  { %249 = dma.vmem_to_hbm [thread:$0]  %s242_s16, 256, %s244_s19, [#allocation4], %s442_s26, %s442_s26, %s443_s27  }
 0x23c   :  { %439 = dma.done.wait [#allocation4], 256  }
 0x23d   :  { %440 = vsyncadd [#allocation4], 4294967040 }
 0x23e   :  { %254 = vsyncpa [#allocation3], 1 }
 0x23f   :  { %255 = vsyncpa [#allocation6], 1 }
 0x240   :  { %256 = vsyncpa [#allocation9], 1 }
 0x241   :  { %257 = vsyncpa [#allocation4], 1 }

</bundles_post_ra>
